<compile_context>
chip_gen: v5e
topology: v5e:2x2
jax: 0.10.0
libtpu: 0.0.40
codegen_flags: <defaults>
</compile_context>

<pallas_src>
import jax
import jax.numpy as jnp
from jax import lax
from jax.experimental import pallas as pl
from jax.experimental.pallas import tpu as pltpu

_LANES = 128


def _make_kernel(tr, n_valid, need_mask):
    """Build the kernel with static tile rows `tr`, valid-per-group count and mask flag."""

    def kernel(lb_ref, ub_ref, x_ref, out_ref):
        g = pl.program_id(0)   # parameter group
        r = pl.program_id(1)   # row block within the group (reduction axis)

        @pl.when(r == 0)
        def _init():
            out_ref[...] = jnp.zeros_like(out_ref)

        x = x_ref[...].astype(jnp.float32)      # (1, tr, 128), upcast in-kernel
        lb = lb_ref[g]                          # f32 scalar from SMEM
        ub = ub_ref[g]
        # relu(x - ub) + relu(lb - x) == max(max(x - ub, lb - x), 0) when lb <= ub.
        penalty = jnp.maximum(jnp.maximum(x - ub, lb - x), 0.0)

        if need_mask:
            # Mask the per-group element tail (lane pad + ragged last row block).
            row = lax.broadcasted_iota(jnp.int32, (1, tr, _LANES), 1)
            lane = lax.broadcasted_iota(jnp.int32, (1, tr, _LANES), 2)
            elem = (r * tr + row) * _LANES + lane
            penalty = jnp.where(elem < n_valid, penalty, 0.0)

        # Collapse sublane groups of 8 (pure VPU adds; the reshape matches the
        # (8,128) vreg tiling exactly) into the resident 4 KiB output block.
        partial = penalty.reshape(tr // 8, 8, _LANES).sum(axis=0)
        out_ref[...] += partial.reshape(1, 8, _LANES)

    return kernel


def mean_range_bound_loss(x, lb, ub, factor, *, block_rows=None):
    """x: (P, ...) parameters; lb, ub: (P,) bounds; factor: scalar. Returns scalar f32.

    Matches sum_i factor * mean(relu(x[i]-ub[i]) + relu(lb[i]-x[i])) / 2.  The
    fused max() penalty assumes lb[i] <= ub[i] (physical bounds); the tail
    padding/masking does NOT rely on that assumption.
    """
    p = x.shape[0]
    x2 = x.reshape(p, -1)
    n = x2.shape[1]
    dtype = x2.dtype
    itemsize = jnp.dtype(dtype).itemsize

    lb32 = jnp.asarray(lb, jnp.float32).reshape(p)
    ub32 = jnp.asarray(ub, jnp.float32).reshape(p)

    # Lane tail: fallback zero-pad so (P, N) reshapes (pure row-major regroup,
    # no relayout) to (P, rows_per_group, 128).  Padded elements are masked
    # in-kernel, so the fill value is irrelevant.
    lane_pad = (-n) % _LANES
    if lane_pad:
        # TODO(synk): stream the ragged lane tail directly instead of this extra
        # HBM pass when N % 128 != 0.
        x2 = jnp.pad(x2, ((0, 0), (0, lane_pad)))
    rows_per_group = (n + lane_pad) // _LANES
    x3 = x2.reshape(p, rows_per_group, _LANES)

    # Sublane multiple for the packed dtype (f32: 8, bf16: 16, int8/fp8: 32).
    sub = max(8, 32 // itemsize)
    if block_rows is None:
        # ~4 MiB x tile: near HBM roofline, and double-buffered it fits every
        # generation's scoped-VMEM default with large headroom (v7x included).
        block_rows = (4 << 20) // (_LANES * itemsize)
    tr = min(block_rows, rows_per_group)
    tr = -(-tr // sub) * sub                       # round up to sublane multiple
    num_row_blocks = pl.cdiv(rows_per_group, tr)

    # Mask only if the grid covers more elements per group than actually exist.
    need_mask = (n != num_row_blocks * tr * _LANES)

    grid_spec = pltpu.PrefetchScalarGridSpec(
        num_scalar_prefetch=0,
        grid=(p, num_row_blocks),
        in_specs=[
            pl.BlockSpec(memory_space=pltpu.MemorySpace.SMEM),      # lb (P,)
            pl.BlockSpec(memory_space=pltpu.MemorySpace.SMEM),      # ub (P,)
            pl.BlockSpec((1, tr, _LANES), lambda g, r: (g, r, 0)),  # x rows
        ],
        out_specs=pl.BlockSpec((1, 8, _LANES), lambda g, r: (g, 0, 0)),
    )

    partials = pl.pallas_call(
        _make_kernel(tr, n, need_mask),
        out_shape=jax.ShapeDtypeStruct((p, 8, _LANES), jnp.float32),
        grid_spec=grid_spec,
        # Groups are independent (each owns its output block) -> "parallel" lets
        # a 2-TC chip (v7x) split them across cores; the row axis is the serial
        # reduction.
        # TODO(synk): when P < num TensorCores, also split the row axis across
        # cores (extra parallel axis + per-core output rows) to fill v7x.
        compiler_params=pltpu.CompilerParams(
            dimension_semantics=("parallel", "arbitrary")),
    )(lb32, ub32, x3)

    # Equal-size groups: sum_i factor * mean_i / 2 == factor/(2N) * total sum.
    scale = jnp.asarray(factor, jnp.float32) / (2.0 * n)
    return jnp.sum(partials) * scale


def _reference(x, lb, ub, factor):
    # Pure-JAX reference mirroring the PyTorch loop.
    loss = 0.0
    for i in range(x.shape[0]):
        ub_loss = jnp.maximum(x[i] - ub[i], 0.0)
        lb_loss = jnp.maximum(lb[i] - x[i], 0.0)
        loss = loss + factor * jnp.mean(ub_loss + lb_loss) / 2.0
    return loss


if __name__ == "__main__":
    key = jax.random.PRNGKey(0)
    k1, k2 = jax.random.split(key)

    # P = 4 parameter groups, N = 256 values per group (lane-aligned case).
    P, N = 4, 256
    x = jax.random.uniform(k1, (P, N), jnp.float32, minval=-0.5, maxval=1.5)
    lb = jnp.array([0.0, 0.1, 0.2, 0.0], jnp.float32)
    ub = jnp.array([1.0, 0.9, 1.2, 0.8], jnp.float32)
    factor = jnp.float32(100.0)

    loss = jax.block_until_ready(mean_range_bound_loss(x, lb, ub, factor))
    ref = _reference(x, lb, ub, factor)
    assert jnp.allclose(loss, ref, rtol=1e-5, atol=1e-5), (loss, ref)

    # Non-lane-aligned group size exercises the pad fallback + in-kernel mask.
    N2 = 200
    x2 = jax.random.uniform(k2, (P, N2), jnp.float32, minval=-0.5, maxval=1.5)
    loss2 = jax.block_until_ready(mean_range_bound_loss(x2, lb, ub, factor))
    ref2 = _reference(x2, lb, ub, factor)
    assert jnp.allclose(loss2, ref2, rtol=1e-5, atol=1e-5), (loss2, ref2)

    print("KERNEL_OK")
</pallas_src>

<mosaic_0001>
module attributes {stable_mosaic.version = 11 : i64} {
  func.func @kernel(%arg0: i32, %arg1: i32, %arg2: memref<4xf32, #tpu.memory_space<smem>>, %arg3: memref<4xf32, #tpu.memory_space<smem>>, %arg4: memref<1x8x128xf32, #tpu.memory_space<vmem>>, %arg5: memref<1x8x128xf32, #tpu.memory_space<vmem>>) attributes {dimension_semantics = [#tpu.dimension_semantics<parallel>, #tpu.dimension_semantics<arbitrary>], iteration_bounds = array<i64: 4, 1>, scalar_prefetch = 0 : i64, scratch_operands = 0 : i64, tpu.core_type = #tpu.core_type<tc>, window_params = [{transform_indices = @transform_0, window_bounds = array<i64: 4>}, {transform_indices = @transform_1, window_bounds = array<i64: 4>}, {transform_indices = @transform_2, window_bounds = array<i64: 1, 8, 128>}, {transform_indices = @transform_3, window_bounds = array<i64: 1, 8, 128>}]} {
    %c0_i32 = arith.constant 0 : i32
    %0 = arith.cmpi eq, %arg1, %c0_i32 : i32
    %1 = arith.extui %0 : i1 to i32
    %c0_i32_0 = arith.constant 0 : i32
    %2 = arith.cmpi ne, %1, %c0_i32_0 : i32
    scf.if %2 {
      %cst_11 = arith.constant 0.000000e+00 : f32
      %32 = vector.broadcast %cst_11 : f32 to vector<1x8x128xf32>
      %c0_12 = arith.constant 0 : index
      %c0_13 = arith.constant 0 : index
      %c0_14 = arith.constant 0 : index
      %33 = vector.load %arg5[%c0_12, %c0_13, %c0_14] : memref<1x8x128xf32, #tpu.memory_space<vmem>>, vector<1x8x128xf32>
      tpu.vector_store %arg5[%c0_12, %c0_13, %c0_14], %32 {strides = array<i32>} : memref<1x8x128xf32, #tpu.memory_space<vmem>>, vector<1x8x128xf32>,
    } else {
    }
    %c0 = arith.constant 0 : index
    %c0_1 = arith.constant 0 : index
    %c0_2 = arith.constant 0 : index
    %3 = vector.load %arg4[%c0, %c0_1, %c0_2] : memref<1x8x128xf32, #tpu.memory_space<vmem>>, vector<1x8x128xf32>
    %4 = arith.index_cast %arg0 : i32 to index
    %5 = memref.load %arg2[%4] : memref<4xf32, #tpu.memory_space<smem>>
    %6 = arith.index_cast %arg0 : i32 to index
    %7 = memref.load %arg3[%6] : memref<4xf32, #tpu.memory_space<smem>>
    %8 = vector.broadcast %7 : f32 to vector<1x8x128xf32>
    %9 = arith.subf %3, %8 : vector<1x8x128xf32>
    %10 = vector.broadcast %5 : f32 to vector<1x8x128xf32>
    %11 = arith.subf %10, %3 : vector<1x8x128xf32>
    %12 = arith.maximumf %9, %11 : vector<1x8x128xf32>
    %cst = arith.constant 0.000000e+00 : f32
    %13 = vector.broadcast %cst : f32 to vector<1x8x128xf32>
    %14 = arith.maximumf %12, %13 : vector<1x8x128xf32>
    %15 = tpu.iota {dimensions = array<i32: 1>} : vector<1x8x128xi32>
    %16 = tpu.iota {dimensions = array<i32: 2>} : vector<1x8x128xi32>
    %c8_i32 = arith.constant 8 : i32
    %17 = arith.muli %arg1, %c8_i32 : i32
    %18 = vector.broadcast %17 : i32 to vector<1x8x128xi32>
    %19 = arith.addi %18, %15 : vector<1x8x128xi32>
    %c128_i32 = arith.constant 128 : i32
    %20 = vector.broadcast %c128_i32 : i32 to vector<1x8x128xi32>
    %21 = arith.muli %19, %20 : vector<1x8x128xi32>
    %22 = arith.addi %21, %16 : vector<1x8x128xi32>
    %c256_i32 = arith.constant 256 : i32
    %23 = vector.broadcast %c256_i32 : i32 to vector<1x8x128xi32>
    %24 = arith.cmpi slt, %22, %23 : vector<1x8x128xi32>
    %cst_3 = arith.constant 0.000000e+00 : f32
    %25 = vector.broadcast %cst_3 : f32 to vector<1x8x128xf32>
    %26 = arith.select %24, %14, %25 : vector<1x8x128xi1>, vector<1x8x128xf32>
    %cst_4 = arith.constant dense<0.000000e+00> : vector<8x128xf32>
    %27 = vector.multi_reduction <add>, %26, %cst_4 [0] : vector<1x8x128xf32> to vector<8x128xf32>
    %c0_5 = arith.constant 0 : index
    %c0_6 = arith.constant 0 : index
    %c0_7 = arith.constant 0 : index
    %28 = vector.load %arg5[%c0_5, %c0_6, %c0_7] : memref<1x8x128xf32, #tpu.memory_space<vmem>>, vector<1x8x128xf32>
    %29 = vector.shape_cast %27 : vector<8x128xf32> to vector<1x8x128xf32>
    %30 = arith.addf %28, %29 : vector<1x8x128xf32>
    %c0_8 = arith.constant 0 : index
    %c0_9 = arith.constant 0 : index
    %c0_10 = arith.constant 0 : index
    %31 = vector.load %arg5[%c0_8, %c0_9, %c0_10] : memref<1x8x128xf32, #tpu.memory_space<vmem>>, vector<1x8x128xf32>
    tpu.vector_store %arg5[%c0_8, %c0_9, %c0_10], %30 {strides = array<i32>} : memref<1x8x128xf32, #tpu.memory_space<vmem>>, vector<1x8x128xf32>,
    return
  }
  func.func @transform_0(%arg0: i32, %arg1: i32) -> i32 {
    %c0_i32 = arith.constant 0 : i32
    %c0_i32_0 = arith.constant 0 : i32
    return %c0_i32 : i32
  }
  func.func @transform_1(%arg0: i32, %arg1: i32) -> i32 {
    %c0_i32 = arith.constant 0 : i32
    %c0_i32_0 = arith.constant 0 : i32
    return %c0_i32 : i32
  }
  func.func @transform_2(%arg0: i32, %arg1: i32) -> (i32, i32, i32) {
    %c0_i32 = arith.constant 0 : i32
    %c0_i32_0 = arith.constant 0 : i32
    return %arg0, %arg1, %c0_i32 : i32, i32, i32
  }
  func.func @transform_3(%arg0: i32, %arg1: i32) -> (i32, i32, i32) {
    %c0_i32 = arith.constant 0 : i32
    %c0_i32_0 = arith.constant 0 : i32
    %c0_i32_1 = arith.constant 0 : i32
    return %arg0, %c0_i32, %c0_i32_0 : i32, i32, i32
  }
}

</mosaic_0001>

<bundles_post_ra>
// kernel: tpu_custom_call.1
= control target key start
LH: loop header
LB: loop body
LE: loop exit
PB: predicated region body
PF: predicated region fallthrough
CT: control target
= control target key end

     0   :  { %8 = vsyncpa [#allocation5], 0  ;;  %s805_s0 = inlined_call_operand.hbm [shape: f32[4], index: 0, kind: input, shape index: {}]   ;;  %s806_s1 = inlined_call_operand.hbm [shape: f32[4], index: 1, kind: input, shape index: {}]   ;;  %s807_s2 = inlined_call_operand.hbm [shape: f32[4,2,128], index: 2, kind: input, shape index: {}]   ;;  %s808_s3 = inlined_call_operand.hbm [shape: f32[4,8,128], index: 3, kind: output, shape index: {}]  }
   0x1   :  { %9 = vsyncpa [#allocation7], 0 }
   0x2   :  { %10 = vsyncpa [#allocation3], 0 }
   0x3   :  { %12 = vsyncpa [#allocation3 + $0x1], 0 }
   0x4   :  { %13 = vsyncpa [#allocation4], 0 }
   0x5   :  { %15 = vsyncpa [#allocation4 + $0x1], 0  ;;  %s655_s12 = smov 0   ;;  %s657_s13 = smov 0  }
   0x6   :  { %s659_s14 = smov 0   ;;  %s661_s15 = smov 0  }
   0x7   :  { %s663_s16 = smov 0   ;;  %s665_s17 = smov 0  }
   0x8 LB: > { %s388_s18 = sadd.s32 4294967295, %s629_s17   ;;  %s389_s19 = sadd.s32 4294967294, %s629_s17   ;;  %s629_s17 = sphi %s665_s17, %s21_s17   ;;  %s625_s16 = sphi %s663_s16, %s819_s16   ;;  %s621_s15 = sphi %s661_s15, %s818_s15   ;;  %s617_s14 = sphi %s659_s14, %s817_s14   ;;  %s613_s13 = sphi %s657_s13, %s816_s13   ;;  %s609_s12 = sphi %s655_s12, %s815_s12  }
   0x9   : > { %s33_s20 = sadd.s32 1, %s625_s16  ;;  %s84_s21 = sadd.s32 1, %s617_s14 }
   0xa   : > { %p35_p0 = scmp.ge.s32.totalorder %s33_s20, 4  ;;  %p91_p1 = scmp.ne.s32.totalorder %s617_s14, %s613_s13 }
   0xb   : > { %p92_p2 = scmp.eq.s32.totalorder %s629_s17, 0  ;;  %p97_p3 = scmp.ne.s32.totalorder %s613_s13, %s609_s12 }
   0xc   : > { %s821_s20 = smov (%p35_p0, %s33_s20), 0  ;;  %p700_p5 = scmp.eq.s32.totalorder %s388_s18, 0 }
   0xd   : > { %p696_p4 = por %p92_p2, %p91_p1  ;;  %s79_s24 = ssub.s32 %s625_s16, %s821_s20 }
   0xe   : > { %p121_p6 = scmp.eq.s32.totalorder %s388_s18, 3  ;;  %p82_p7 = scmp.eq.s32.totalorder %s79_s24, 0 }
   0xf   : > { %p708_p8 = por %p700_p5, %p97_p3  ;;  %p127_p10 = scmp.eq.s32.totalorder %s389_s19, 3 }
  0x10   : > { %p712_p9 = por %p121_p6, %p91_p1  ;;  %p390_p12 = scmp.ge.s32.totalorder %s629_s17, 1 }
  0x11   : > { %s717_s27 = scalar_select %p82_p7, %s617_s14, %s84_s21  }
  0x12   : > { %p719_p11 = por %p127_p10, %p97_p3  ;;  %p134_p13 = scmp.lt.s32.totalorder %s629_s17, 5 }
  0x13   : > { %s146_s5 = sshll.u32 %s805_s0, 4  ;;  %s156_s8 = sshll.u32 %s806_s1, 4  ;;  %s147_s5 = int_to_ptr.hbm [resolvable:$true] %s146_s5  ;;  %s157_s8 = int_to_ptr.hbm [resolvable:$true] %s156_s8 }
  0x14   : > { %p725_p0 = pnand %p390_p12, %p134_p13  ;;  %s631_s9 = smov [#allocation2]  }
  0x15   : > { %s632_s10 = smov [#allocation6]   ;;  %p393_p3 = scmp.ge.s32.totalorder %s629_s17, 4 }
  0x16   : > { %p416_p1 = pneg %p725_p0 }
  0x17   : > { %163 = sbr.rel (%p393_p3) target bundleno = 37 (0x25), region = 24 }
  0x18   : > { %p417_p2 = pnand %p416_p1, %p700_p5 }
  0x1a   : > { %419 = dma.hbm_to_smem (!%p417_p2), %s147_s5, 16, %s631_s9, [#allocation5]  }
  0x1b   : > { %422 = dma.hbm_to_smem (!%p417_p2), %s157_s8, 16, %s632_s10, [#allocation7]  }
  0x1c   : > { %166 = sbr.rel (!%p696_p4) target bundleno = 37 (0x25), region = 28  ;;  %s167_s11 = sand.u32 (%p696_p4), 1, %s617_s14  }
  0x1d   : > { %s394_s18 = sshll.u32 (%p696_p4), %s167_s11, 3  ;;  %s168_s19 = scalar_lea.sflag (%p696_p4), [#allocation3], %s167_s11 }
  0x1e   : > { %s171_s21 = scalar_lea.vmem (%p696_p4), [#allocation8], %s394_s18 }
  0x21   : > { %177 = vsyncadd %s168_s19, 96  ;;  %s395_s24 = sshll.u32 %s625_s16, 1  ;;  %s185_s30 = sshll.u32 %s171_s21, 4  ;;  %s186_s30 = int_to_ptr.vmem [resolvable:$true] %s185_s30 }
  0x22   : > { %s181_s5 = scalar_lea.hbm %s807_s2, %s395_s24  ;;  %s633_s8 = smov 32  }
  0x23   : > { %s183_s7 = sshll.u32 %s181_s5, 4  ;;  %s634_s9 = smov 2   ;;  %s184_s7 = int_to_ptr.hbm [resolvable:$true] %s183_s7 }
  0x24   : > { %191 = dma.hbm_to_vmem [thread:$0]  %s184_s7, 32, %s186_s30, %s168_s19, %s633_s8, %s633_s8, %s634_s9  }
  0x25 PF: > { %197 = sbr.rel (%p725_p0) target bundleno = 69 (0x45), region = 32 }
  0x2a   : > { %592 = dma.done.wait (%p700_p5), [#allocation5], 16  }
  0x2b   : > { %594 = vsyncadd (%p700_p5), [#allocation5], 4294967280 }
  0x2c   : > { %596 = dma.done.wait (%p700_p5), [#allocation7], 16  }
  0x2d   : > { %598 = vsyncadd (%p700_p5), [#allocation7], 4294967280  ;;  %s758_s22 = sand.u32 1, %s613_s13  }
  0x2e   : > { %s399_s29 = sshll.u32 %s758_s22, 3  ;;  %s210_s10 = scalar_lea.sflag [#allocation3], %s758_s22 }
  0x2f   : > { %s213_s11 = scalar_lea.vmem [#allocation8], %s399_s29 }
  0x30   : > { %600 = dma.done.wait (%p708_p8), %s210_s10, 128  }
  0x31   : > { %602 = vsyncadd (%p708_p8), %s210_s10, 4294967168 }
  0x32   : > { %219 = sfence }
  0x33   : > { %s247_s23 = sld [smem:[#allocation2 + %s621_s15]]  ;;  %v255_v0 = vlaneseq  ;;  %v246_v3 = vld [vmem:[%s213_s11] sm:$0xff]  ;;  %s402_s19 = sshll.u32 %s621_s15, 3 }
  0x34   : > { %s248_s18 = sld [smem:[#allocation6 + %s621_s15]]  ;;  %s281_s24 = scalar_lea.hbm %s808_s3, %s402_s19 }
  0x35   : > { %v256_v1 = vshrl.u32 %v255_v0, 7  ;;  %v258_v2 = vand.u32 127, %v255_v0  ;;  %s237_s30 = scalar_lea.vmem [#allocation9], %s399_s29  ;;  %s285_s6 = sshll.u32 %s281_s24, 4  ;;  %s286_s6 = int_to_ptr.hbm [resolvable:$true] %s285_s6 }
  0x36   : > { %s283_s4 = sshll.u32 %s237_s30, 4  ;;  %s271_s15 = scalar_lea.sflag [#allocation4], %s758_s22  ;;  %s284_s4 = int_to_ptr.vmem [resolvable:$true] %s283_s4 }
  0x37   : > { %v262_v4 = vmul.u32 128, %v256_v1  ;;  %s553_s5 = sshra.s32 %s286_s6, 4  ;;  %s559_s10 = scalar_lea.hbm %s808_s3, 32  ;;  %s554_s5 = int_to_ptr.hbm [resolvable:$true] %s553_s5 }
  0x38   : > { %s555_s7 = scalar_lea.hbm %s554_s5, 8  ;;  %p560_p7 = scmp.lt.s32.totalorder %s554_s5, %s808_s3 }
  0x39   : > { %v251_v5 = vstv %s247_s23  ;;  %v263_v8 = vadd.s32 %v262_v4, %v258_v2  ;;  %p556_p4 = scmp.ne.s32.totalorder %s554_s5, %s555_s7  ;;  %p561_p8 = scmp.lt.s32.totalorder %s559_s10, %s555_s7 }
  0x3a   : > { %v249_v6 = vstv %s248_s18  ;;  %v252_v7 = vsub.f32 %v251_v5, %v246_v3 }
  0x3b   : > { %v250_v9 = vsub.f32 %v246_v3, %v249_v6  ;;  %vm264_vm0 = vcmp.lt.s32.totalorder %v263_v8, 256  ;;  %p557_p5 = pnand %p556_p4, %p712_p9  ;;  %p562_p10 = por %p561_p8, %p560_p7 }
  0x3d   : > { %v253_v10 = vmax.f32 %v250_v9, %v252_v7  ;;  %p558_p6 = pneg %p557_p5 }
  0x3f   : > { %v254_v11 = vmax.f32 %v253_v10, 0.0  ;;  %p563_p12 = pnand %p562_p10, %p558_p6 }
  0x41   : > { %v265_v12 = vsel %vm264_vm0, %v254_v11, 0.0 }
  0x42   : > { %269 = vst [vmem:[%s237_s30] sm:$0xff] %v265_v12 }
  0x43   : > { %566 = shalt.err (!%p563_p12)
}
  0x44   : > { %414 = dma.vmem_to_hbm [thread:$0]  (%p712_p9), %s284_s4, 128, %s286_s6, %s271_s15  }
  0x45 PF: > { %p431_p13 = scmp.ge.s32.totalorder %s629_s17, 2  ;;  %s297_s22 = sand.u32 1, %s609_s12  }
  0x46   : > { %s298_s23 = scalar_lea.sflag [#allocation4], %s297_s22 }
  0x47   : > { %p424_p0 = pnand %p431_p13, %p719_p11 }
  0x49   : > { %p425_p1 = pneg %p424_p0 }
  0x4b   : > { %604 = dma.done.wait (%p425_p1), %s298_s23, 128  }
  0x4c   : > { %606 = vsyncadd (%p425_p1), %s298_s23, 4294967168  ;;  %s21_s17 = sadd.s32 1, %s629_s17   ;;  %s815_s12 = smov %s613_s13 }
  0x4d   : > { %p18_p2 = scmp.ge.s32.totalorder %s21_s17, 6   ;;  %s816_s13 = smov %s617_s14 }
  0x4e   : > { %s817_s14 = smov %s717_s27  ;;  %s818_s15 = smov %s625_s16 }
  0x4f   : > { %s819_s16 = smov %s821_s20  ;;  %20 = sbr.rel (!%p18_p2) target bundleno = 8 (0x8), region = 90 }
  0x54   :  { %304 = vsyncpa [#allocation3], 1 }
  0x55   :  { %306 = vsyncpa [#allocation3 + $0x1], 1 }
  0x56   :  { %307 = vsyncpa [#allocation4], 1 }
  0x57   :  { %309 = vsyncpa [#allocation4 + $0x1], 1 }
  0x58   :  { %310 = vsyncpa [#allocation5], 1 }
  0x59   :  { %312 = vsyncpa [#allocation5 + $0x1], 1 }
  0x5a   :  { %313 = vsyncpa [#allocation7], 1 }

</bundles_post_ra>
